<compile_context>
chip_gen: v7x
topology: tpu7x:2x2x1
jax: 0.10.0
libtpu: 0.0.40
codegen_flags: <defaults>
</compile_context>

<pallas_src>
import functools

import jax
import jax.numpy as jnp
from jax import lax
from jax.experimental import pallas as pl
from jax.experimental.pallas import tpu as pltpu


def _accuracy_kernel(out_ref, tgt_ref, cnt_out_ref, cnt_ref, *,
                     total_b, tile_b, steps_per_shard):
    """out_ref: [TB, C] logits (native dtype), tgt_ref: [TB, 1] i32,
    cnt_out_ref: [1, 8, 128] i32 per-shard count tile, cnt_ref: [1, 1] i32 scratch."""
    c = pl.program_id(0)            # shard (parallel; megacore split on v7x)
    i = pl.program_id(1)            # batch tile within shard (accumulation axis)
    n_i = pl.num_programs(1)

    @pl.when(i == 0)
    def _init():
        cnt_ref[...] = jnp.zeros_like(cnt_ref)

    # Upcast in-register only (bf16 -> f32 is exact; preserves argmax order,
    # works on v5e which lacks a bf16 VALU).
    logits = out_ref[...].astype(jnp.float32)                       # [TB, C]
    TB, C = logits.shape

    # torch.argmax(dim=1): first occurrence of the row max.
    row_max = jnp.max(logits, axis=1, keepdims=True)                # [TB, 1]
    col_idx = lax.broadcasted_iota(jnp.int32, (TB, C), 1)           # [TB, C]
    masked = jnp.where(logits == row_max, col_idx, jnp.int32(C))    # non-max -> C
    pred = jnp.min(masked, axis=1, keepdims=True)                   # [TB, 1] i32
    # TODO(synk): a row whose max is NaN yields pred == C (never correct) here,
    # whereas torch.argmax returns the NaN position.

    # Mask rows past the real batch (ragged last tile / clamped shard tiles).
    row_in_tile = lax.broadcasted_iota(jnp.int32, (TB, 1), 0)
    global_row = (c * steps_per_shard + i) * tile_b + row_in_tile
    valid = global_row < total_b

    match = jnp.logical_and(pred == tgt_ref[...], valid)            # [TB, 1] bool
    cnt_ref[...] += jnp.sum(match.astype(jnp.int32), axis=(0, 1), keepdims=True)

    @pl.when(i == n_i - 1)
    def _finalize():
        # Broadcast the shard's count over its lane-dense (8, 128) output tile;
        # the wrapper reads [shard, 0, 0].
        cnt_out_ref[...] = jnp.broadcast_to(
            cnt_ref[...].reshape(1, 1, 1), cnt_out_ref.shape)


def _choose_tile_b(batch, n_classes, itemsize):
    """Pick a batch-tile so the double-buffered logits tile stays ~<=16 MiB
    (fits the scoped-VMEM budget on every generation, incl. v7x's 64 MiB)."""
    budget = 16 * 1024 * 1024
    tb = budget // max(1, 2 * n_classes * itemsize)
    tb = int(min(tb, 2048, batch))
    # Sublane packing: 8 rows/vreg for 4-byte, 16 for bf16, 32 for int8.
    align = {4: 8, 2: 16, 1: 32}.get(itemsize, 8)
    if tb < batch:
        tb = max(align, (tb // align) * align)
    else:
        tb = batch
    return tb


def my_metric(output: jax.Array, target: jax.Array, tile_b: int | None = None) -> jax.Array:
    """output: [B, C] float logits (any float dtype), target: [B] or [B, 1] int labels.

    Returns a scalar float32 accuracy, matching MyMetric.forward.
    """
    B, C = output.shape
    tgt = target.reshape(B, 1).astype(jnp.int32)

    itemsize = jnp.dtype(output.dtype).itemsize
    if tile_b is None:
        tile_b = _choose_tile_b(B, C, itemsize)
    n_tiles = int(pl.cdiv(B, tile_b))

    # On v7x (2 TensorCores/chip) split the batch tiles across cores when there
    # is more than one tile; harmless (degenerate shard) on single-TC chips.
    n_shards = 2 if n_tiles >= 2 else 1
    steps_per_shard = int(pl.cdiv(n_tiles, n_shards))
    last_blk = n_tiles - 1

    kernel = functools.partial(
        _accuracy_kernel, total_b=B, tile_b=tile_b, steps_per_shard=steps_per_shard)

    def block_map(c, i):
        # Clamp so shards whose padded tiles run past the array re-read the last
        # real block; the in-kernel `valid` mask zeroes their contribution.
        return (jnp.minimum(c * steps_per_shard + i, last_blk), 0)

    # VMEM budget: double-buffered logits + lane-padded target + output + slack.
    vmem_need = (2 * tile_b * C * itemsize
                 + 2 * tile_b * 128 * 4
                 + 2 * 8 * 128 * 4
                 + (1 << 20))
    vmem_limit = int(min(max(2 * vmem_need, 32 << 20), 48 << 20))

    counts = pl.pallas_call(
        kernel,
        out_shape=jax.ShapeDtypeStruct((n_shards, 8, 128), jnp.int32),
        grid_spec=pltpu.PrefetchScalarGridSpec(
            num_scalar_prefetch=0,
            grid=(n_shards, steps_per_shard),
            in_specs=[
                pl.BlockSpec((tile_b, C), block_map),   # logits tile, native dtype
                pl.BlockSpec((tile_b, 1), block_map),   # target tile
            ],
            out_specs=pl.BlockSpec((1, 8, 128), lambda c, i: (c, 0, 0)),
            scratch_shapes=[pltpu.VMEM((1, 1), jnp.int32)],
        ),
        compiler_params=pltpu.CompilerParams(
            dimension_semantics=("parallel", "arbitrary"),
            vmem_limit_bytes=vmem_limit,
        ),
        cost_estimate=pl.CostEstimate(
            flops=2 * B * C,
            transcendentals=0,
            bytes_accessed=B * C * itemsize + B * 4 + n_shards * 8 * 128 * 4,
        ),
    )(output, tgt)

    correct = jnp.sum(counts[:, 0, 0])                 # exact int32 count
    return correct.astype(jnp.float32) / jnp.float32(B)


if __name__ == "__main__":
    key = jax.random.PRNGKey(0)
    k_out, k_tgt, k_out2, k_tgt2 = jax.random.split(key, 4)

    # Case 1: small f32 batch (single tile, single shard).
    B, C = 8, 32
    output = jax.random.normal(k_out, (B, C), dtype=jnp.float32)
    target = jax.random.randint(k_tgt, (B,), 0, C, dtype=jnp.int32)
    acc = my_metric(output, target)
    jax.block_until_ready(acc)
    ref = jnp.mean((jnp.argmax(output, axis=1) == target).astype(jnp.float32))
    assert jnp.allclose(acc, ref), (acc, ref)

    # Case 2: bf16 logits, ragged batch, forced small tile -> exercises the
    # multi-tile accumulation, 2-shard grid, masking, and clamped-block paths.
    B2, C2 = 40, 16
    output2 = jax.random.normal(k_out2, (B2, C2), dtype=jnp.bfloat16)
    target2 = jax.random.randint(k_tgt2, (B2,), 0, C2, dtype=jnp.int32)
    acc2 = my_metric(output2, target2, tile_b=16)
    jax.block_until_ready(acc2)
    ref2 = jnp.mean(
        (jnp.argmax(output2.astype(jnp.float32), axis=1) == target2).astype(jnp.float32))
    assert jnp.allclose(acc2, ref2), (acc2, ref2)

    print("KERNEL_OK")
</pallas_src>

<mosaic_0001>
module attributes {stable_mosaic.version = 11 : i64} {
  func.func @_accuracy_kernel(%arg0: i32, %arg1: i32, %arg2: memref<8x32xf32, #tpu.memory_space<vmem>>, %arg3: memref<8x1xi32, #tpu.memory_space<vmem>>, %arg4: memref<1x8x128xi32, #tpu.memory_space<vmem>>, %arg5: memref<1x1xi32, #tpu.memory_space<vmem>>) attributes {dimension_semantics = [#tpu.dimension_semantics<parallel>, #tpu.dimension_semantics<arbitrary>], iteration_bounds = array<i64: 1, 1>, scalar_prefetch = 0 : i64, scratch_operands = 1 : i64, tpu.core_type = #tpu.core_type<tc>, window_params = [{transform_indices = @transform_0, window_bounds = array<i64: 8, 32>}, {transform_indices = @transform_1, window_bounds = array<i64: 8, 1>}, {transform_indices = @transform_2, window_bounds = array<i64: 1, 8, 128>}]} {
    %c0_i32 = arith.constant 0 : i32
    %0 = arith.cmpi eq, %arg1, %c0_i32 : i32
    %1 = arith.extui %0 : i1 to i32
    %c0_i32_0 = arith.constant 0 : i32
    %2 = arith.cmpi ne, %1, %c0_i32_0 : i32
    scf.if %2 {
      %c0_i32_13 = arith.constant 0 : i32
      %36 = vector.broadcast %c0_i32_13 : i32 to vector<1x1xi32>
      %c0_14 = arith.constant 0 : index
      %c0_15 = arith.constant 0 : index
      %37 = vector.load %arg5[%c0_14, %c0_15] : memref<1x1xi32, #tpu.memory_space<vmem>>, vector<1x1xi32>
      tpu.vector_store %arg5[%c0_14, %c0_15], %36 {strides = array<i32>} : memref<1x1xi32, #tpu.memory_space<vmem>>, vector<1x1xi32>,
    } else {
    }
    %c0 = arith.constant 0 : index
    %c0_1 = arith.constant 0 : index
    %3 = vector.load %arg2[%c0, %c0_1] : memref<8x32xf32, #tpu.memory_space<vmem>>, vector<8x32xf32>
    %cst = arith.constant dense<0xFF800000> : vector<8xf32>
    %4 = vector.multi_reduction <maximumf>, %3, %cst [1] : vector<8x32xf32> to vector<8xf32>
    %5 = vector.shape_cast %4 : vector<8xf32> to vector<8x1xf32>
    %6 = tpu.iota {dimensions = array<i32: 1>} : vector<8x32xi32>
    %7 = vector.broadcast %5 : vector<8x1xf32> to vector<8x32xf32>
    %8 = arith.cmpf oeq, %3, %7 : vector<8x32xf32>
    %c32_i32 = arith.constant 32 : i32
    %9 = vector.broadcast %c32_i32 : i32 to vector<8x32xi32>
    %10 = arith.select %8, %6, %9 : vector<8x32xi1>, vector<8x32xi32>
    %cst_2 = arith.constant dense<2147483647> : vector<8xi32>
    %11 = vector.multi_reduction <minsi>, %10, %cst_2 [1] : vector<8x32xi32> to vector<8xi32>
    %12 = vector.shape_cast %11 : vector<8xi32> to vector<8x1xi32>
    %13 = tpu.iota {dimensions = array<i32: 0>} : vector<8x1xi32>
    %c1_i32 = arith.constant 1 : i32
    %14 = arith.muli %arg0, %c1_i32 : i32
    %15 = arith.addi %14, %arg1 : i32
    %c8_i32 = arith.constant 8 : i32
    %16 = arith.muli %15, %c8_i32 : i32
    %17 = vector.broadcast %16 : i32 to vector<8x1xi32>
    %18 = arith.addi %17, %13 : vector<8x1xi32>
    %c8_i32_3 = arith.constant 8 : i32
    %19 = vector.broadcast %c8_i32_3 : i32 to vector<8x1xi32>
    %20 = arith.cmpi slt, %18, %19 : vector<8x1xi32>
    %c0_4 = arith.constant 0 : index
    %c0_5 = arith.constant 0 : index
    %21 = vector.load %arg3[%c0_4, %c0_5] : memref<8x1xi32, #tpu.memory_space<vmem>>, vector<8x1xi32>
    %22 = arith.cmpi eq, %12, %21 : vector<8x1xi32>
    %23 = arith.andi %22, %20 : vector<8x1xi1>
    %c0_6 = arith.constant 0 : index
    %c0_7 = arith.constant 0 : index
    %24 = vector.load %arg5[%c0_6, %c0_7] : memref<1x1xi32, #tpu.memory_space<vmem>>, vector<1x1xi32>
    %25 = arith.extui %23 : vector<8x1xi1> to vector<8x1xi32>
    %26 = vector.shape_cast %25 : vector<8x1xi32> to vector<1x8x1xi32>
    %cst_8 = arith.constant dense<0> : vector<1xi32>
    %27 = vector.multi_reduction <add>, %26, %cst_8 [1, 2] : vector<1x8x1xi32> to vector<1xi32>
    %28 = vector.shape_cast %27 : vector<1xi32> to vector<1x1x1xi32>
    %29 = vector.extract %28[0, 0, 0] : i32 from vector<1x1x1xi32>
    %30 = vector.broadcast %29 : i32 to vector<1x1xi32>
    %31 = arith.addi %24, %30 : vector<1x1xi32>
    %c0_9 = arith.constant 0 : index
    %c0_10 = arith.constant 0 : index
    %32 = vector.load %arg5[%c0_9, %c0_10] : memref<1x1xi32, #tpu.memory_space<vmem>>, vector<1x1xi32>
    tpu.vector_store %arg5[%c0_9, %c0_10], %31 {strides = array<i32>} : memref<1x1xi32, #tpu.memory_space<vmem>>, vector<1x1xi32>,
    %c0_i32_11 = arith.constant 0 : i32
    %33 = arith.cmpi eq, %arg1, %c0_i32_11 : i32
    %34 = arith.extui %33 : i1 to i32
    %c0_i32_12 = arith.constant 0 : i32
    %35 = arith.cmpi ne, %34, %c0_i32_12 : i32
    scf.if %35 {
      %c0_13 = arith.constant 0 : index
      %c0_14 = arith.constant 0 : index
      %36 = vector.load %arg5[%c0_13, %c0_14] : memref<1x1xi32, #tpu.memory_space<vmem>>, vector<1x1xi32>
      %37 = vector.shape_cast %36 : vector<1x1xi32> to vector<1x1x1xi32>
      %38 = vector.shape_cast %37 : vector<1x1x1xi32> to vector<1x1x1xi32>
      %39 = vector.broadcast %38 : vector<1x1x1xi32> to vector<1x8x128xi32>
      %c0_15 = arith.constant 0 : index
      %c0_16 = arith.constant 0 : index
      %c0_17 = arith.constant 0 : index
      %40 = vector.load %arg4[%c0_15, %c0_16, %c0_17] : memref<1x8x128xi32, #tpu.memory_space<vmem>>, vector<1x8x128xi32>
      tpu.vector_store %arg4[%c0_15, %c0_16, %c0_17], %39 {strides = array<i32>} : memref<1x8x128xi32, #tpu.memory_space<vmem>>, vector<1x8x128xi32>,
    } else {
    }
    return
  }
  func.func @transform_0(%arg0: i32, %arg1: i32) -> (i32, i32) {
    %c1_i32 = arith.constant 1 : i32
    %0 = arith.muli %arg0, %c1_i32 : i32
    %1 = arith.addi %0, %arg1 : i32
    %c0_i32 = arith.constant 0 : i32
    %2 = arith.minsi %1, %c0_i32 : i32
    %c0_i32_0 = arith.constant 0 : i32
    %c0_i32_1 = arith.constant 0 : i32
    return %2, %c0_i32_0 : i32, i32
  }
  func.func @transform_1(%arg0: i32, %arg1: i32) -> (i32, i32) {
    %c1_i32 = arith.constant 1 : i32
    %0 = arith.muli %arg0, %c1_i32 : i32
    %1 = arith.addi %0, %arg1 : i32
    %c0_i32 = arith.constant 0 : i32
    %2 = arith.minsi %1, %c0_i32 : i32
    %c0_i32_0 = arith.constant 0 : i32
    %c0_i32_1 = arith.constant 0 : i32
    return %2, %c0_i32_0 : i32, i32
  }
  func.func @transform_2(%arg0: i32, %arg1: i32) -> (i32, i32, i32) {
    %c0_i32 = arith.constant 0 : i32
    %c0_i32_0 = arith.constant 0 : i32
    %c0_i32_1 = arith.constant 0 : i32
    return %arg0, %c0_i32, %c0_i32_0 : i32, i32, i32
  }
}

</mosaic_0001>

<bundles_post_ra>
// kernel: tpu_custom_call.1
= control target key start
LH: loop header
LB: loop body
LE: loop exit
PB: predicated region body
PF: predicated region fallthrough
CT: control target
= control target key end

     0   :  { %vm73_vm0 = vcmask 261120   ;;  %s239_s0 = inlined_call_operand.vmem [shape: f32[8,32], index: 0, kind: input, shape index: {}]   ;;  %s240_s1 = inlined_call_operand.vmem [shape: s32[8,1], index: 1, kind: input, shape index: {}]   ;;  %s241_s2 = inlined_call_operand.hbm [shape: s32[1,8,128], index: 2, kind: output, shape index: {}]  }
   0x1   :  { %v72_v0 = vld [vmem:[%s239_s0] sm:$0xff] }
   0x2   :  { %7 = vsyncpa [#allocation4], 0  ;;  %v74_v1 = vsel %vm73_vm0, %v72_v0, -inf  ;;  %v77_v2 = vlaneseq  ;;  %v202_v13 = vmov 0   ;;  %v103_v18 = vld [vmem:[%s240_s1] sm:$0xff]  ;;  %vm108_vm3 = vcmask 7168  }
   0x3   :  { %75 = vmax.xlane.f32.xlu0 %v74_v1  ;;  %176 = vset.pattern.permute.xlu1 %v202_v13  ;;  %vm70_vm5 = vcmask 0   ;;  %s203_s12 = smov [#allocation3]  }
   0x4   :  { %v78_v3 = vand.u32 127, %v77_v2  ;;  %177 = vset.pattern.permute.xlu0 %v202_v13  ;;  %71 = vst.msk [vmem:[#allocation2] sm:$0x1] %vm70_vm5, %v202_v13  ;;  %s151_s13 = sshll.u32 %s203_s12, 4  ;;  %s152_s13 = int_to_ptr.vmem [resolvable:$true] %s151_s13 }
   0x5   :  { %s178_s14 = scalar_lea.vmem %s152_s13, 128  ;;  %p183_p1 = scmp.lt.s32.totalorder %s152_s13, %s152_s13 }
   0x6   :  { %p179_p0 = scmp.ne.s32.totalorder %s152_s13, %s178_s14  ;;  %p184_p2 = scmp.lt.s32.totalorder %s178_s14, %s178_s14 }
   0x8   :  { %p185_p3 = por %p184_p2, %p183_p1 }
   0xa   :  { %p186_p4 = pnand %p185_p3, %p179_p0 }
   0xb   :  { %v106_v38 = vld [vmem:[#allocation2] sm:$0x1] }
  0x90   :  { %v76_v4 = vpop.xlane.xlu0 %75 }
  0x91   :  { %vm79_vm1 = vcmp.eq.f32.partialorder %v72_v0, %v76_v4 }
  0x92   :  { %v80_v5 = vsel %vm79_vm1, %v78_v3, 32 }
  0x93   :  { %v81_v6 = vsel %vm73_vm0, %v80_v5, 2147483647 }
  0x94   :  { %v83_v7 = vshra.s32 %v81_v6, 16  ;;  %v82_v9 = vand.u32 65535, %v81_v6 }
  0x96   :  { %v85_v8 = vcvt.s32.f32 %v83_v7  ;;  %v84_v11 = vcvt.s32.f32 %v82_v9 }
  0x98   :  { %86 = vmin.xlane.f32.xlu0 %v85_v8 }
 0x125   :  { %v87_v10 = vpop.xlane.xlu0 %86 }
 0x126   :  { %vm88_vm2 = vcmp.eq.f32.partialorder %v85_v8, %v87_v10  ;;  %v93_v14 = vcvt.f32.s32 %v87_v10 }
 0x127   :  { %v89_v12 = vsel %vm88_vm2, %v84_v11, inf }
 0x128   :  { %90 = vmin.xlane.f32.xlu1 %v89_v12  ;;  %v94_v16 = vshll.u32 %v93_v14, 16 }
 0x1b5   :  { %v91_v15 = vpop.xlane.xlu1 %90 }
 0x1b6   :  { %v92_v17 = vcvt.f32.s32 %v91_v15 }
 0x1b8   :  { %v95_v19 = vadd.s32 %v94_v16, %v92_v17 }
 0x1ba   :  { %vm104_vm4 = vcmp.eq.s32.totalorder %v95_v19, %v103_v18 }
 0x1bb   :  { %v107_v20 = vsel %vm104_vm4, 1, %v202_v13 }
 0x1bc   :  { %v109_v21 = vsel %vm108_vm3, %v107_v20, 0 }
 0x1bd   :  { %v111_v22 = vshrl.u32 %v109_v21, 16  ;;  %v110_v23 = vand.u32 65535, %v109_v21 }
 0x1bf   :  { %v113_v24 = vcvt.s32.f32 %v111_v22  ;;  %v112_v25 = vcvt.s32.f32 %v110_v23 }
 0x1c1   :  { %116 = vadd.xlane.f32.xlu1 %v113_v24  ;;  %114 = vadd.xlane.f32.xlu0 %v112_v25 }
 0x24e   :  { %v117_v26 = vpop.xlane.xlu1 %116  ;;  %v115_v27 = vpop.xlane.xlu0 %114 }
 0x24f   :  { %v119_v28 = vcvt.f32.s32 %v117_v26  ;;  %v118_v30 = vcvt.f32.s32 %v115_v27 }
 0x251   :  { %v120_v29 = vshll.u32 %v119_v28, 16 }
 0x253   :  { %v121_v31 = vadd.s32 %v120_v29, %v118_v30 }
 0x255   :  { %v122_v32 = vrot.slane %v121_v31, 4 }
 0x257   :  { %v123_v33 = vadd.s32 %v122_v32, %v121_v31 }
 0x259   :  { %v124_v34 = vrot.slane %v123_v33, 2 }
 0x25b   :  { %v125_v35 = vadd.s32 %v124_v34, %v123_v33 }
 0x25d   :  { %v126_v36 = vrot.slane %v125_v35, 1 }
 0x25f   :  { %v127_v37 = vadd.s32 %v126_v36, %v125_v35 }
 0x261   :  { %172 = vpush %v127_v37 }
 0x292   :  { %s173_s1 = spop %172 }
 0x293   :  { %v129_v39 = vstv %s173_s1 }
 0x294   :  { %v130_v40 = vadd.s32 %v129_v39, %v106_v38 }
 0x296   :  { %132 = vst.msk [vmem:[#allocation2] sm:$0x1] %vm70_vm5, %v130_v40 }
 0x29d   :  { %v171_v41 = vld [vmem:[#allocation2] ss:$0 sm:$0xff] }
 0x29e   :  { %142 = vperm.xlu1 %176, %v171_v41  }
 0x31d   :  { %v143_v42 = vpop.permute.xlu1 %142 }
 0x31e   :  { %144 = vst [vmem:[#allocation3] sm:$0xff] %v143_v42 }
 0x31f   :  { %189 = shalt.err (!%p186_p4)
}
 0x320   :  { %s190_s17 = scalar_lea.hbm %s241_s2, 128 }
 0x321   :  { %p191_p5 = scmp.ne.s32.totalorder %s241_s2, %s190_s17  ;;  %p194_p6 = scmp.lt.u32.totalorder %s190_s17, %s241_s2 }
 0x323   :  { %p196_p7 = pnand %p194_p6, %p191_p5 }
 0x325   :  { %199 = shalt.err (!%p196_p7)
}
 0x326   :  { %154 = dma.vmem_to_hbm [thread:$0]  %s152_s13, 128, %s241_s2, [#allocation4]  }
 0x327   :  { %200 = dma.done.wait [#allocation4], 128  }
 0x328   :  { %201 = vsyncadd [#allocation4], 4294967168 }
 0x329   :  { %158 = vsyncpa [#allocation4], 1 }

</bundles_post_ra>
